<compile_context>
chip_gen: v5e
topology: v5e:2x2
jax: 0.10.0
libtpu: 0.0.40
codegen_flags: <defaults>
</compile_context>

<pallas_src>
import functools

import jax
import jax.numpy as jnp
from jax.experimental import pallas as pl
from jax.experimental.pallas import tpu as pltpu


_TARGET_BLOCK_BYTES = 1 << 20        # ~1 MiB per (in|out) block copy
_ROW_TILE_THRESHOLD_BYTES = 2 << 20  # per-image size above which we row-tile
_VMEM_CAP_BYTES = 48 << 20           # never request more (v7x physical = 64 MiB)


def _maybe_vmem_limit(est_bytes):
    if est_bytes > (12 << 20):
        return {"vmem_limit_bytes": int(min(est_bytes + (8 << 20), _VMEM_CAP_BYTES))}
    return {}


# ---------------------------------------------------------------------------
# Slab path: whole images, lane-packed and sublane-stacked into one big block.
# ---------------------------------------------------------------------------

def _sobel_slab_kernel(x_ref, o_ref, *, h, w):
    """x_ref / o_ref: (1, TH, WL) with TH = tn*h (sublanes), WL = g*w (lanes)."""
    _, th_tot, wl_tot = x_ref.shape
    x = x_ref[0].astype(jnp.float32)

    rows = jax.lax.broadcasted_iota(jnp.int32, (th_tot, wl_tot), 0)
    cols = jax.lax.broadcasted_iota(jnp.int32, (th_tot, wl_tot), 1)
    top = (rows % h) == 0
    bot = (rows % h) == (h - 1)
    lft = (cols % w) == 0
    rgt = (cols % w) == (w - 1)

    # Shifted neighbours (roll(x, k)[i] = x[i-k]); contributions that would come
    # from outside an image (including the adjacent packed image / wrap-around)
    # are zeroed, reproducing conv2d's zero padding.
    up = jnp.where(top, 0.0, pltpu.roll(x, shift=1, axis=0))            # x[i-1, j]
    dn = jnp.where(bot, 0.0, pltpu.roll(x, shift=th_tot - 1, axis=0))   # x[i+1, j]

    vs = up + 2.0 * x + dn      # vertical [1, 2, 1]
    vd = up - dn                # vertical [1, 0, -1]

    # Finish |sobel_x| before building the sobel_y operands to limit the number
    # of slab-sized temporaries that are live at once.
    vs_l = jnp.where(lft, 0.0, pltpu.roll(vs, shift=1, axis=1))            # vs[i, j-1]
    vs_r = jnp.where(rgt, 0.0, pltpu.roll(vs, shift=wl_tot - 1, axis=1))   # vs[i, j+1]
    acc = jnp.abs(vs_r - vs_l)                                             # |Kx * x|

    vd_l = jnp.where(lft, 0.0, pltpu.roll(vd, shift=1, axis=1))
    vd_r = jnp.where(rgt, 0.0, pltpu.roll(vd, shift=wl_tot - 1, axis=1))
    acc = acc + jnp.abs(vd_l + 2.0 * vd + vd_r)                            # + |Ky * x|

    o_ref[0] = acc.astype(o_ref.dtype)


def _pick_slab_tiling(n, h, w, itemsize):
    # Lane packing: put g narrow images side by side so stores are lane-dense.
    g = 1
    if w < 128:
        g = max(1, min(n, 128 // w))
    ng = pl.cdiv(n, g)                                  # number of image groups
    # Sublane stacking: tn groups per grid step (~_TARGET_BLOCK_BYTES / copy).
    group_bytes = h * g * w * itemsize
    tn = max(1, _TARGET_BLOCK_BYTES // group_bytes)
    tn = min(tn, ng)
    nb = pl.cdiv(ng, tn)
    return g, tn, nb


def _sobelxy_slab(x):
    n, _, h, w = x.shape
    itemsize = jnp.dtype(x.dtype).itemsize
    g, tn, nb = _pick_slab_tiling(n, h, w, itemsize)
    n_pad = nb * tn * g

    xs = x.reshape(n, h, w)
    if n_pad != n:
        xs = jnp.pad(xs, ((0, n_pad - n), (0, 0), (0, 0)))
    # (nb, tn, g, h, w) -> (nb, tn, h, g, w) -> (nb, tn*h, g*w).  For g == 1 the
    # transpose is degenerate (free); for narrow images it is a tiny repack that
    # buys a lane-dense output store inside the kernel.
    xs = (xs.reshape(nb, tn, g, h, w)
            .transpose(0, 1, 3, 2, 4)
            .reshape(nb, tn * h, g * w))

    block = (1, tn * h, g * w)
    block_bytes = tn * h * g * w * itemsize
    est_vmem = 4 * block_bytes + 6 * tn * h * g * w * 4   # in/out dbl-buffered + f32 temps
    compiler_kwargs = {"dimension_semantics": ("parallel",)}
    compiler_kwargs.update(_maybe_vmem_limit(est_vmem))

    out = pl.pallas_call(
        functools.partial(_sobel_slab_kernel, h=h, w=w),
        out_shape=jax.ShapeDtypeStruct(xs.shape, x.dtype),
        grid_spec=pltpu.PrefetchScalarGridSpec(
            num_scalar_prefetch=0,
            grid=(nb,),
            in_specs=[pl.BlockSpec(block, lambda i: (i, 0, 0))],
            out_specs=pl.BlockSpec(block, lambda i: (i, 0, 0)),
        ),
        compiler_params=pltpu.CompilerParams(**compiler_kwargs),
    )(xs)

    out = (out.reshape(nb, tn, h, g, w)
              .transpose(0, 1, 3, 2, 4)
              .reshape(n_pad, h, w)[:n])
    return out.reshape(n, 1, h, w)


# ---------------------------------------------------------------------------
# Row-tiled path: large images, +/-1-row halo windows, manual double-buffered
# DMA so VMEM usage is bounded independently of the image size.
# ---------------------------------------------------------------------------

def _sobel_rows_kernel(xp_hbm, o_ref, buf, sem, *, th, nj, total):
    """xp_hbm: (N, nj*th + 2, W) zero-padded rows in HBM (memory_space=ANY).
    o_ref: (1, th, W) output row block.  buf: (2, th+2, W) VMEM double buffer."""
    i = pl.program_id(0)
    j = pl.program_id(1)
    s = i * nj + j                      # linear step (grid executes in order)

    def start_fetch(step, slot):
        ii = step // nj
        jj = step % nj
        pltpu.make_async_copy(
            xp_hbm.at[ii, pl.ds(jj * th, th + 2), :],
            buf.at[slot],
            sem.at[slot],
        ).start()

    @pl.when(s == 0)
    def _():                            # prime the pipeline
        start_fetch(0, 0)

    slot = s % 2

    @pl.when(s + 1 < total)
    def _():                            # prefetch next row window
        start_fetch(s + 1, 1 - slot)

    pltpu.make_async_copy(
        xp_hbm.at[0, pl.ds(0, th + 2), :], buf.at[slot], sem.at[slot]
    ).wait()

    xw = buf[slot].astype(jnp.float32)   # (th + 2, W), halo rows included
    wl = xw.shape[-1]
    up = xw[0:th, :]
    mid = xw[1:th + 1, :]
    dn = xw[2:th + 2, :]

    vs = up + 2.0 * mid + dn
    vd = up - dn

    cols = jax.lax.broadcasted_iota(jnp.int32, (th, wl), 1)
    lft = cols == 0
    rgt = cols == (wl - 1)

    vs_l = jnp.where(lft, 0.0, pltpu.roll(vs, shift=1, axis=1))
    vs_r = jnp.where(rgt, 0.0, pltpu.roll(vs, shift=wl - 1, axis=1))
    acc = jnp.abs(vs_r - vs_l)

    vd_l = jnp.where(lft, 0.0, pltpu.roll(vd, shift=1, axis=1))
    vd_r = jnp.where(rgt, 0.0, pltpu.roll(vd, shift=wl - 1, axis=1))
    acc = acc + jnp.abs(vd_l + 2.0 * vd + vd_r)

    o_ref[0] = acc.astype(o_ref.dtype)


def _sobelxy_row_tiled(x, row_block=None):
    n, _, h, w = x.shape
    itemsize = jnp.dtype(x.dtype).itemsize

    if row_block is None:
        row_block = max(8, _TARGET_BLOCK_BYTES // (w * itemsize))
    th = max(8, (min(row_block, h) // 8) * 8)     # multiple of 8 sublanes
    nj = pl.cdiv(h, th)
    ho = nj * th
    total = n * nj

    xs = x.reshape(n, h, w)
    # Physical zero padding: 1 halo row above, (ho - h + 1) rows below, so every
    # row window [j*th, j*th + th + 2) is in bounds for the DMA.
    xp = jnp.pad(xs, ((0, 0), (1, ho - h + 1), (0, 0)))

    est_vmem = (2 * (th + 2) * w + 2 * th * w) * itemsize + 6 * th * w * 4
    # Both axes "arbitrary": the prefetch chain (start at step s, wait at s+1)
    # requires strictly sequential grid execution.
    compiler_kwargs = {"dimension_semantics": ("arbitrary", "arbitrary")}
    compiler_kwargs.update(_maybe_vmem_limit(est_vmem))

    out = pl.pallas_call(
        functools.partial(_sobel_rows_kernel, th=th, nj=nj, total=total),
        out_shape=jax.ShapeDtypeStruct((n, ho, w), x.dtype),
        grid_spec=pltpu.PrefetchScalarGridSpec(
            num_scalar_prefetch=0,
            grid=(n, nj),
            in_specs=[pl.BlockSpec(memory_space=pl.ANY)],
            out_specs=pl.BlockSpec((1, th, w), lambda i, j: (i, j, 0)),
            scratch_shapes=[
                pltpu.VMEM((2, th + 2, w), x.dtype),
                pltpu.SemaphoreType.DMA((2,)),
            ],
        ),
        compiler_params=pltpu.CompilerParams(**compiler_kwargs),
    )(xp)

    return out[:, :h, :].reshape(n, 1, h, w)


# ---------------------------------------------------------------------------
# Public wrapper (matches the PyTorch Sobelxy.forward).
# ---------------------------------------------------------------------------

def sobelxy(x):
    """x: (N, 1, H, W) -> |conv2d(x, Kx, pad=1)| + |conv2d(x, Ky, pad=1)|."""
    n, c, h, w = x.shape
    assert c == 1, "Sobelxy weight is [1,1,3,3]; input must have a single channel"
    itemsize = jnp.dtype(x.dtype).itemsize
    if h * w * itemsize > _ROW_TILE_THRESHOLD_BYTES and h >= 64:
        return _sobelxy_row_tiled(x)
    # TODO(synk): images over the threshold with < 64 rows (very wide, short)
    # would need lane tiling with a column halo; the slab path still handles
    # them, just with a raised VMEM limit.
    return _sobelxy_slab(x)


def sobelxy_ref(x):
    """Pure-JAX reference (conv2d with zero padding=1) for correctness checks."""
    kx = jnp.array([[-1., 0., 1.], [-2., 0., 2.], [-1., 0., 1.]], jnp.float32)
    ky = jnp.array([[1., 2., 1.], [0., 0., 0.], [-1., -2., -1.]], jnp.float32)
    dn = jax.lax.conv_dimension_numbers(x.shape, (1, 1, 3, 3), ("NCHW", "OIHW", "NCHW"))
    xf = x.astype(jnp.float32)
    sx = jax.lax.conv_general_dilated(xf, kx[None, None], (1, 1), ((1, 1), (1, 1)),
                                      dimension_numbers=dn)
    sy = jax.lax.conv_general_dilated(xf, ky[None, None], (1, 1), ((1, 1), (1, 1)),
                                      dimension_numbers=dn)
    return (jnp.abs(sx) + jnp.abs(sy)).astype(x.dtype)


if __name__ == "__main__":
    key = jax.random.PRNGKey(0)

    # Slab path: narrow-W lane repacking, odd batch sizes, lane-aligned W.
    for shape in [(2, 1, 16, 16), (5, 1, 24, 40), (4, 1, 32, 128)]:
        key, sub = jax.random.split(key)
        x = jax.random.normal(sub, shape, dtype=jnp.float32)
        out = jax.block_until_ready(sobelxy(x))
        ref = jax.block_until_ready(sobelxy_ref(x))
        assert out.shape == x.shape, (out.shape, x.shape)
        assert jnp.allclose(out, ref, atol=1e-4, rtol=1e-5), f"slab mismatch at {shape}"

    # Row-tiled path (halo windows + manual double-buffered DMA), forced onto a
    # small image via an explicit row block so it stays cheap to validate.
    key, sub = jax.random.split(key)
    x = jax.random.normal(sub, (2, 1, 160, 256), dtype=jnp.float32)
    out = jax.block_until_ready(_sobelxy_row_tiled(x, row_block=64))
    ref = jax.block_until_ready(sobelxy_ref(x))
    assert out.shape == x.shape, (out.shape, x.shape)
    assert jnp.allclose(out, ref, atol=1e-4, rtol=1e-5), "row-tiled mismatch"

    print("KERNEL_OK")
</pallas_src>

<mosaic_0001>
module attributes {stable_mosaic.version = 11 : i64} {
  func.func @_sobel_slab_kernel(%arg0: i32, %arg1: memref<1x16x32xf32, #tpu.memory_space<vmem>>, %arg2: memref<1x16x32xf32, #tpu.memory_space<vmem>>) attributes {dimension_semantics = [#tpu.dimension_semantics<parallel>], iteration_bounds = array<i64: 1>, scalar_prefetch = 0 : i64, scratch_operands = 0 : i64, tpu.core_type = #tpu.core_type<tc>, window_params = [{transform_indices = @transform_0, window_bounds = array<i64: 1, 16, 32>}, {transform_indices = @transform_1, window_bounds = array<i64: 1, 16, 32>}]} {
    %c0 = arith.constant 0 : index
    %c0_0 = arith.constant 0 : index
    %c0_1 = arith.constant 0 : index
    %0 = vector.load %arg1[%c0, %c0_0, %c0_1] : memref<1x16x32xf32, #tpu.memory_space<vmem>>, vector<1x16x32xf32>
    %1 = vector.shape_cast %0 : vector<1x16x32xf32> to vector<16x32xf32>
    %2 = tpu.iota {dimensions = array<i32: 0>} : vector<16x32xi32>
    %3 = tpu.iota {dimensions = array<i32: 1>} : vector<16x32xi32>
    %c16_i32 = arith.constant 16 : i32
    %c0_i32 = arith.constant 0 : i32
    %4 = arith.cmpi eq, %c16_i32, %c0_i32 : i32
    %c1_i32 = arith.constant 1 : i32
    %5 = arith.select %4, %c1_i32, %c16_i32 : i32
    %6 = vector.broadcast %5 : i32 to vector<16x32xi32>
    %7 = arith.remsi %2, %6 : vector<16x32xi32>
    %c0_i32_2 = arith.constant 0 : i32
    %8 = vector.broadcast %c0_i32_2 : i32 to vector<16x32xi32>
    %9 = arith.cmpi ne, %7, %8 : vector<16x32xi32>
    %c0_i32_3 = arith.constant 0 : i32
    %10 = vector.broadcast %c0_i32_3 : i32 to vector<16x32xi32>
    %11 = arith.cmpi slt, %7, %10 : vector<16x32xi32>
    %c0_i32_4 = arith.constant 0 : i32
    %12 = arith.cmpi slt, %5, %c0_i32_4 : i32
    %13 = vector.broadcast %12 : i1 to vector<16x32xi1>
    %14 = vector.broadcast %13 : vector<16x32xi1> to vector<16x32xi1>
    %15 = arith.xori %11, %14 : vector<16x32xi1>
    %16 = arith.andi %15, %9 : vector<16x32xi1>
    %17 = vector.broadcast %5 : i32 to vector<16x32xi32>
    %18 = arith.addi %7, %17 : vector<16x32xi32>
    %19 = arith.select %16, %18, %7 : vector<16x32xi1>, vector<16x32xi32>
    %c0_i32_5 = arith.constant 0 : i32
    %20 = vector.broadcast %c0_i32_5 : i32 to vector<16x32xi32>
    %21 = arith.cmpi eq, %19, %20 : vector<16x32xi32>
    %c16_i32_6 = arith.constant 16 : i32
    %c0_i32_7 = arith.constant 0 : i32
    %22 = arith.cmpi eq, %c16_i32_6, %c0_i32_7 : i32
    %c1_i32_8 = arith.constant 1 : i32
    %23 = arith.select %22, %c1_i32_8, %c16_i32_6 : i32
    %24 = vector.broadcast %23 : i32 to vector<16x32xi32>
    %25 = arith.remsi %2, %24 : vector<16x32xi32>
    %c0_i32_9 = arith.constant 0 : i32
    %26 = vector.broadcast %c0_i32_9 : i32 to vector<16x32xi32>
    %27 = arith.cmpi ne, %25, %26 : vector<16x32xi32>
    %c0_i32_10 = arith.constant 0 : i32
    %28 = vector.broadcast %c0_i32_10 : i32 to vector<16x32xi32>
    %29 = arith.cmpi slt, %25, %28 : vector<16x32xi32>
    %c0_i32_11 = arith.constant 0 : i32
    %30 = arith.cmpi slt, %23, %c0_i32_11 : i32
    %31 = vector.broadcast %30 : i1 to vector<16x32xi1>
    %32 = vector.broadcast %31 : vector<16x32xi1> to vector<16x32xi1>
    %33 = arith.xori %29, %32 : vector<16x32xi1>
    %34 = arith.andi %33, %27 : vector<16x32xi1>
    %35 = vector.broadcast %23 : i32 to vector<16x32xi32>
    %36 = arith.addi %25, %35 : vector<16x32xi32>
    %37 = arith.select %34, %36, %25 : vector<16x32xi1>, vector<16x32xi32>
    %c15_i32 = arith.constant 15 : i32
    %38 = vector.broadcast %c15_i32 : i32 to vector<16x32xi32>
    %39 = arith.cmpi eq, %37, %38 : vector<16x32xi32>
    %c16_i32_12 = arith.constant 16 : i32
    %c0_i32_13 = arith.constant 0 : i32
    %40 = arith.cmpi eq, %c16_i32_12, %c0_i32_13 : i32
    %c1_i32_14 = arith.constant 1 : i32
    %41 = arith.select %40, %c1_i32_14, %c16_i32_12 : i32
    %42 = vector.broadcast %41 : i32 to vector<16x32xi32>
    %43 = arith.remsi %3, %42 : vector<16x32xi32>
    %c0_i32_15 = arith.constant 0 : i32
    %44 = vector.broadcast %c0_i32_15 : i32 to vector<16x32xi32>
    %45 = arith.cmpi ne, %43, %44 : vector<16x32xi32>
    %c0_i32_16 = arith.constant 0 : i32
    %46 = vector.broadcast %c0_i32_16 : i32 to vector<16x32xi32>
    %47 = arith.cmpi slt, %43, %46 : vector<16x32xi32>
    %c0_i32_17 = arith.constant 0 : i32
    %48 = arith.cmpi slt, %41, %c0_i32_17 : i32
    %49 = vector.broadcast %48 : i1 to vector<16x32xi1>
    %50 = vector.broadcast %49 : vector<16x32xi1> to vector<16x32xi1>
    %51 = arith.xori %47, %50 : vector<16x32xi1>
    %52 = arith.andi %51, %45 : vector<16x32xi1>
    %53 = vector.broadcast %41 : i32 to vector<16x32xi32>
    %54 = arith.addi %43, %53 : vector<16x32xi32>
    %55 = arith.select %52, %54, %43 : vector<16x32xi1>, vector<16x32xi32>
    %c0_i32_18 = arith.constant 0 : i32
    %56 = vector.broadcast %c0_i32_18 : i32 to vector<16x32xi32>
    %57 = arith.cmpi eq, %55, %56 : vector<16x32xi32>
    %c16_i32_19 = arith.constant 16 : i32
    %c0_i32_20 = arith.constant 0 : i32
    %58 = arith.cmpi eq, %c16_i32_19, %c0_i32_20 : i32
    %c1_i32_21 = arith.constant 1 : i32
    %59 = arith.select %58, %c1_i32_21, %c16_i32_19 : i32
    %60 = vector.broadcast %59 : i32 to vector<16x32xi32>
    %61 = arith.remsi %3, %60 : vector<16x32xi32>
    %c0_i32_22 = arith.constant 0 : i32
    %62 = vector.broadcast %c0_i32_22 : i32 to vector<16x32xi32>
    %63 = arith.cmpi ne, %61, %62 : vector<16x32xi32>
    %c0_i32_23 = arith.constant 0 : i32
    %64 = vector.broadcast %c0_i32_23 : i32 to vector<16x32xi32>
    %65 = arith.cmpi slt, %61, %64 : vector<16x32xi32>
    %c0_i32_24 = arith.constant 0 : i32
    %66 = arith.cmpi slt, %59, %c0_i32_24 : i32
    %67 = vector.broadcast %66 : i1 to vector<16x32xi1>
    %68 = vector.broadcast %67 : vector<16x32xi1> to vector<16x32xi1>
    %69 = arith.xori %65, %68 : vector<16x32xi1>
    %70 = arith.andi %69, %63 : vector<16x32xi1>
    %71 = vector.broadcast %59 : i32 to vector<16x32xi32>
    %72 = arith.addi %61, %71 : vector<16x32xi32>
    %73 = arith.select %70, %72, %61 : vector<16x32xi1>, vector<16x32xi32>
    %c15_i32_25 = arith.constant 15 : i32
    %74 = vector.broadcast %c15_i32_25 : i32 to vector<16x32xi32>
    %75 = arith.cmpi eq, %73, %74 : vector<16x32xi32>
    %c1_i32_26 = arith.constant 1 : i32
    %76 = tpu.dynamic_rotate %1 by %c1_i32_26 dim 0 : vector<16x32xf32>, i32 -> vector<16x32xf32>
    %cst = arith.constant 0.000000e+00 : f32
    %77 = vector.broadcast %cst : f32 to vector<16x32xf32>
    %78 = arith.select %21, %77, %76 : vector<16x32xi1>, vector<16x32xf32>
    %c15_i32_27 = arith.constant 15 : i32
    %79 = tpu.dynamic_rotate %1 by %c15_i32_27 dim 0 : vector<16x32xf32>, i32 -> vector<16x32xf32>
    %cst_28 = arith.constant 0.000000e+00 : f32
    %80 = vector.broadcast %cst_28 : f32 to vector<16x32xf32>
    %81 = arith.select %39, %80, %79 : vector<16x32xi1>, vector<16x32xf32>
    %cst_29 = arith.constant 2.000000e+00 : f32
    %82 = vector.broadcast %cst_29 : f32 to vector<16x32xf32>
    %83 = arith.mulf %82, %1 : vector<16x32xf32>
    %84 = arith.addf %78, %83 : vector<16x32xf32>
    %85 = arith.addf %84, %81 : vector<16x32xf32>
    %86 = arith.subf %78, %81 : vector<16x32xf32>
    %c1_i32_30 = arith.constant 1 : i32
    %87 = tpu.dynamic_rotate %85 by %c1_i32_30 dim 1 : vector<16x32xf32>, i32 -> vector<16x32xf32>
    %cst_31 = arith.constant 0.000000e+00 : f32
    %88 = vector.broadcast %cst_31 : f32 to vector<16x32xf32>
    %89 = arith.select %57, %88, %87 : vector<16x32xi1>, vector<16x32xf32>
    %c31_i32 = arith.constant 31 : i32
    %90 = tpu.dynamic_rotate %85 by %c31_i32 dim 1 : vector<16x32xf32>, i32 -> vector<16x32xf32>
    %cst_32 = arith.constant 0.000000e+00 : f32
    %91 = vector.broadcast %cst_32 : f32 to vector<16x32xf32>
    %92 = arith.select %75, %91, %90 : vector<16x32xi1>, vector<16x32xf32>
    %93 = arith.subf %92, %89 : vector<16x32xf32>
    %94 = math.absf %93 : vector<16x32xf32>
    %c1_i32_33 = arith.constant 1 : i32
    %95 = tpu.dynamic_rotate %86 by %c1_i32_33 dim 1 : vector<16x32xf32>, i32 -> vector<16x32xf32>
    %cst_34 = arith.constant 0.000000e+00 : f32
    %96 = vector.broadcast %cst_34 : f32 to vector<16x32xf32>
    %97 = arith.select %57, %96, %95 : vector<16x32xi1>, vector<16x32xf32>
    %c31_i32_35 = arith.constant 31 : i32
    %98 = tpu.dynamic_rotate %86 by %c31_i32_35 dim 1 : vector<16x32xf32>, i32 -> vector<16x32xf32>
    %cst_36 = arith.constant 0.000000e+00 : f32
    %99 = vector.broadcast %cst_36 : f32 to vector<16x32xf32>
    %100 = arith.select %75, %99, %98 : vector<16x32xi1>, vector<16x32xf32>
    %cst_37 = arith.constant 2.000000e+00 : f32
    %101 = vector.broadcast %cst_37 : f32 to vector<16x32xf32>
    %102 = arith.mulf %101, %86 : vector<16x32xf32>
    %103 = arith.addf %97, %102 : vector<16x32xf32>
    %104 = arith.addf %103, %100 : vector<16x32xf32>
    %105 = math.absf %104 : vector<16x32xf32>
    %106 = arith.addf %94, %105 : vector<16x32xf32>
    %c0_38 = arith.constant 0 : index
    %c0_39 = arith.constant 0 : index
    %c0_40 = arith.constant 0 : index
    %107 = vector.load %arg2[%c0_38, %c0_39, %c0_40] : memref<1x16x32xf32, #tpu.memory_space<vmem>>, vector<1x16x32xf32>
    %108 = vector.shape_cast %107 : vector<1x16x32xf32> to vector<16x32xf32>
    %109 = vector.shape_cast %106 : vector<16x32xf32> to vector<1x16x32xf32>
    tpu.vector_store %arg2[%c0_38, %c0_39, %c0_40], %109 {strides = array<i32>} : memref<1x16x32xf32, #tpu.memory_space<vmem>>, vector<1x16x32xf32>,
    return
  }
  func.func @transform_0(%arg0: i32) -> (i32, i32, i32) {
    %c0_i32 = arith.constant 0 : i32
    %c0_i32_0 = arith.constant 0 : i32
    %c0_i32_1 = arith.constant 0 : i32
    return %arg0, %c0_i32, %c0_i32_0 : i32, i32, i32
  }
  func.func @transform_1(%arg0: i32) -> (i32, i32, i32) {
    %c0_i32 = arith.constant 0 : i32
    %c0_i32_0 = arith.constant 0 : i32
    %c0_i32_1 = arith.constant 0 : i32
    return %arg0, %c0_i32, %c0_i32_0 : i32, i32, i32
  }
}

</mosaic_0001>

<bundles_post_ra>
// kernel: tpu_custom_call.1
= control target key start
LH: loop header
LB: loop body
LE: loop exit
PB: predicated region body
PF: predicated region fallthrough
CT: control target
= control target key end

     0   :  { %6 = vsyncpa [#allocation3], 0  ;;  %s319_s0 = inlined_call_operand.hbm [shape: f32[1,16,32], index: 0, kind: input, shape index: {}]   ;;  %s320_s1 = inlined_call_operand.hbm [shape: f32[1,16,32], index: 1, kind: output, shape index: {}]  }
   0x1   :  { %7 = vsyncpa [#allocation4], 0  ;;  %s12_s8 = sshll.u32 %s319_s0, 4  ;;  %s252_s9 = smov [#allocation2]   ;;  %s13_s8 = int_to_ptr.hbm [resolvable:$true] %s12_s8 }
   0x2   :  { %s14_s10 = sshll.u32 %s252_s9, 4  ;;  %s253_s11 = smov 128   ;;  %s15_s10 = int_to_ptr.vmem [resolvable:$true] %s14_s10 }
   0x3   :  { %s254_s12 = smov 8  }
   0x4   :  { %20 = dma.hbm_to_vmem [thread:$0]  %s13_s8, 256, %s15_s10, [#allocation3], %s253_s11, %s253_s11, %s254_s12  }
   0x5   :  { %248 = dma.done.wait [#allocation3], 256  }
   0x6   :  { %249 = vsyncadd [#allocation3], 4294967040  ;;  %v27_v0 = vlaneseq  ;;  %v25_v4 = vld [vmem:[#allocation2] sm:$0xff]  ;;  %v26_v5 = vld [vmem:[#allocation2 + $0x8] sm:$0xff]  ;;  %s255_s0 = smov 32   ;;  %vm96_vm4 = vcmask 1047808  }
   0x7   :  { %v74_v6 = vrot.slane %v25_v4, 7  ;;  %v75_v7 = vrot.slane %v26_v5, 7  ;;  %v81_v8 = vrot.slane %v25_v4, 1  ;;  %v82_v9 = vrot.slane %v26_v5, 1  ;;  %s256_s13 = smov 97   ;;  %s257_s14 = smov 127  }
   0x8   :  { %v28_v1 = vshrl.u32 %v27_v0, 7  ;;  %v88_v10 = vmul.f32 2.0, %v25_v4  ;;  %v89_v17 = vmul.f32 2.0, %v26_v5  ;;  %v31_v42 = vand.u32 127, %v27_v0  ;;  %s258_s15 = smov [#allocation5]   ;;  %s180_s19 = sshll.u32 %s320_s1, 4  ;;  %s181_s19 = int_to_ptr.hbm [resolvable:$true] %s180_s19 }
   0x9   :  { %vm171_vm7 = vcmask 261120   ;;  %s178_s16 = sshll.u32 %s258_s15, 4  ;;  %s179_s16 = int_to_ptr.vmem [resolvable:$true] %s178_s16 }
   0xa   :  { %v36_v2 = vand.u32 15, %v28_v1  ;;  %v29_v3 = vadd.s32 8, %v28_v1  ;;  %vm76_vm1 = vcmp.lt.s32.totalorder %v28_v1, 1  ;;  %vm83_vm2 = vcmp.lt.s32.totalorder %v28_v1, 7 }
   0xb   :  { %v78_v11 = vsel %vm76_vm1, %v75_v7, %v74_v6  ;;  %v84_v14 = vsel %vm83_vm2, %v81_v8, %v82_v9  ;;  %v77_v18 = vsel %vm76_vm1, %v74_v6, %v75_v7  ;;  %v85_v20 = vsel %vm83_vm2, %v82_v9, %v81_v8 }
   0xc   :  { %vm56_vm0 = vcmp.eq.s32.totalorder %v36_v2, 0  ;;  %v43_v12 = vand.u32 15, %v29_v3  ;;  %v91_v21 = vadd.f32 %v89_v17, %v77_v18  ;;  %v64_v44 = vand.u32 15, %v31_v42 }
   0xd   :  { %v79_v13 = vsel %vm56_vm0, 0.0, %v78_v11 }
   0xe   :  { %v90_v15 = vadd.f32 %v88_v10, %v79_v13  ;;  %v94_v16 = vsub.f32 %v79_v13, %v84_v14  ;;  %vm59_vm3 = vcmp.eq.s32.totalorder %v43_v12, 15  ;;  %vm287_vm5 = vcmp.eq.s32.totalorder %v64_v44, 0 }
   0xf   :  { %v87_v22 = vsel %vm59_vm3, 0.0, %v85_v20  ;;  %vm291_vm6 = vcmp.eq.s32.totalorder %v64_v44, 15 }
  0x10   :  { %v92_v19 = vadd.f32 %v90_v15, %v84_v14  ;;  %131 = vrot.lane.b32.xlu0 %v94_v16, %s255_s0  ;;  %v95_v23 = vsub.f32 %v77_v18, %v87_v22  ;;  %v93_v24 = vadd.f32 %v91_v21, %v87_v22  ;;  %v161_v47 = vmul.f32 2.0, %v94_v16 }
  0x12   :  { %97 = vrot.lane.b32.xlu1 %v92_v19, %s255_s0  ;;  %v162_v59 = vmul.f32 2.0, %v95_v23 }
  0x18   :  { %134 = vrot.lane.b32.xlu0 %v95_v23, %s255_s0 }
  0x1a   :  { %100 = vrot.lane.b32.xlu1 %v93_v24, %s255_s0 }
  0x82   :  { %v132_v25 = vpop.permute.xlu0 %131 }
  0x83   :  { %v133_v26 = vsel %vm96_vm4, %v132_v25, %v94_v16 }
  0x84   :  { %v98_v27 = vpop.permute.xlu1 %97  ;;  %137 = vrot.lane.b32.xlu2 %v133_v26, %s255_s0 }
  0x85   :  { %v99_v28 = vsel %vm96_vm4, %v98_v27, %v92_v19 }
  0x86   :  { %103 = vrot.lane.b32.xlu0 %v99_v28, %s255_s0 }
  0x8a   :  { %v135_v29 = vpop.permute.xlu0 %134 }
  0x8b   :  { %v136_v30 = vsel %vm96_vm4, %v135_v29, %v95_v23 }
  0x8c   :  { %v101_v31 = vpop.permute.xlu1 %100  ;;  %139 = vrot.lane.b32.xlu2 %v136_v30, %s255_s0 }
  0x8d   :  { %v102_v32 = vsel %vm96_vm4, %v101_v31, %v93_v24 }
  0x8e   :  { %105 = vrot.lane.b32.xlu1 %v102_v32, %s255_s0 }
  0xde   :  { %v138_v33 = vpop.permute.xlu2 %137 }
  0xdf   :  { %v141_v34 = vsel %vm96_vm4, %v138_v33, %v94_v16 }
  0xe0   :  { %145 = vrot.lane.b32.xlu2 %v141_v34, %s256_s13 }
  0xe6   :  { %v140_v35 = vpop.permute.xlu2 %139 }
  0xe7   :  { %v142_v36 = vsel %vm96_vm4, %v140_v35, %v95_v23 }
  0xe8   :  { %147 = vrot.lane.b32.xlu0 %v142_v36, %s256_s13 }
  0xf8   :  { %v104_v37 = vpop.permute.xlu0 %103 }
  0xf9   :  { %v107_v38 = vsel %vm96_vm4, %v104_v37, %v92_v19 }
  0xfa   :  { %119 = vrot.lane.b32.xlu0 %v107_v38, %s257_s14  ;;  %111 = vrot.lane.b32.xlu1 %v107_v38, %s256_s13 }
 0x100   :  { %v106_v39 = vpop.permute.xlu1 %105 }
 0x101   :  { %v108_v40 = vsel %vm96_vm4, %v106_v39, %v93_v24 }
 0x102   :  { %155 = vrot.lane.b32.xlu0 %v142_v36, %s257_s14  ;;  %121 = vrot.lane.b32.xlu1 %v108_v40, %s257_s14 }
 0x103   :  { %113 = vrot.lane.b32.xlu2 %v108_v40, %s256_s13 }
 0x10b   :  { %153 = vrot.lane.b32.xlu2 %v141_v34, %s257_s14 }
 0x13a   :  { %v146_v41 = vpop.permute.xlu2 %145 }
 0x13b   :  { %v151_v50 = vsel %vm287_vm5, 0.0, %v146_v41 }
 0x13c   :  { %v163_v52 = vadd.f32 %v161_v47, %v151_v50 }
 0x15a   :  { %v148_v45 = vpop.permute.xlu0 %147 }
 0x15b   :  { %v152_v62 = vsel %vm287_vm5, 0.0, %v148_v45 }
 0x15c   :  { %v164_v0 = vadd.f32 %v162_v59, %v152_v62 }
 0x15d   :  { %v114_v43 = vpop.permute.xlu2 %113 }
 0x15e   :  { %v118_v3 = vsel %vm287_vm5, 0.0, %v114_v43 }
 0x165   :  { %v154_v49 = vpop.permute.xlu2 %153 }
 0x166   :  { %v159_v51 = vsel %vm291_vm6, 0.0, %v154_v49 }
 0x167   :  { %v165_v53 = vadd.f32 %v163_v52, %v159_v51 }
 0x169   :  { %v167_v60 = vand.u32 2147483647, %v165_v53 }
 0x16c   :  { %v120_v54 = vpop.permute.xlu0 %119  ;;  %v112_v55 = vpop.permute.xlu1 %111 }
 0x16d   :  { %v125_v56 = vsel %vm291_vm6, 0.0, %v120_v54  ;;  %v117_v57 = vsel %vm287_vm5, 0.0, %v112_v55 }
 0x16e   :  { %v127_v58 = vsub.f32 %v125_v56, %v117_v57 }
 0x170   :  { %v129_v61 = vand.u32 2147483647, %v127_v58 }
 0x172   :  { %v169_v63 = vadd.f32 %v167_v60, %v129_v61 }
 0x174   :  { %v156_v1 = vpop.permute.xlu0 %155  ;;  %v122_v2 = vpop.permute.xlu1 %121  ;;  %172 = vst.msk [vmem:[#allocation5] sm:$0xff] %vm171_vm7, %v169_v63 }
 0x175   :  { %v160_v4 = vsel %vm291_vm6, 0.0, %v156_v1  ;;  %v126_v5 = vsel %vm291_vm6, 0.0, %v122_v2 }
 0x176   :  { %v166_v6 = vadd.f32 %v164_v0, %v160_v4  ;;  %v128_v7 = vsub.f32 %v126_v5, %v118_v3 }
 0x178   :  { %v168_v8 = vand.u32 2147483647, %v166_v6  ;;  %v130_v9 = vand.u32 2147483647, %v128_v7 }
 0x17a   :  { %v170_v10 = vadd.f32 %v168_v8, %v130_v9 }
 0x17c   :  { %173 = vst.msk [vmem:[#allocation5 + $0x8] sm:$0xff] %vm171_vm7, %v170_v10 }
 0x17d   :  { %186 = dma.vmem_to_hbm [thread:$0]  %s179_s16, 256, %s181_s19, [#allocation4], %s253_s11, %s253_s11, %s254_s12  }
 0x17e   :  { %250 = dma.done.wait [#allocation4], 256  }
 0x17f   :  { %251 = vsyncadd [#allocation4], 4294967040 }
 0x180   :  { %191 = vsyncpa [#allocation3], 1 }
 0x181   :  { %192 = vsyncpa [#allocation4], 1 }

</bundles_post_ra>
